<compile_context>
chip_gen: v7x
topology: tpu7x:2x2x1
jax: 0.10.0
libtpu: 0.0.40
codegen_flags: <defaults>
</compile_context>

<pallas_src>
import jax
import jax.numpy as jnp
from jax.experimental import pallas as pl
from jax.experimental.pallas import tpu as pltpu


def _identity_alias_kernel(x_hbm_ref, o_hbm_ref, smem_ref):
    # The output HBM buffer is aliased to the input buffer via
    # input_output_aliases, so the result already holds the input bytes.
    # Nothing to compute and nothing to move.  The single SMEM store below is
    # only there to keep the lowered kernel body non-trivial; it is one scalar
    # store and costs nothing relative to any data movement.
    del x_hbm_ref, o_hbm_ref
    smem_ref[0] = jnp.int32(0)


def _identity_hbm_copy_kernel(x_hbm_ref, o_hbm_ref, sem):
    # One whole-array HBM->HBM DMA: no VMEM staging, no grid, no layout
    # constraints on the shape.  start() + wait() inside the single invocation.
    cp = pltpu.make_async_copy(x_hbm_ref, o_hbm_ref, sem)
    cp.start()
    cp.wait()


def identity(x, *, copy=False):
    """Identity forward: returns `x` unchanged.

    copy=False (default): pallas_call whose output HBM buffer is aliased to the
        input buffer -- effectively free when the input can be donated.
    copy=True: materialize a fresh output buffer via a single HBM->HBM DMA
        (useful if the caller must not share storage with the input).
    """
    # Degenerate shapes: nothing to do (and nothing worth launching a kernel for).
    if x.size == 0 or x.ndim == 0:
        return x

    if not copy:
        return pl.pallas_call(
            _identity_alias_kernel,
            out_shape=jax.ShapeDtypeStruct(x.shape, x.dtype),
            in_specs=[pl.BlockSpec(memory_space=pl.ANY)],
            out_specs=pl.BlockSpec(memory_space=pl.ANY),
            scratch_shapes=[pltpu.SMEM((1,), jnp.int32)],
            input_output_aliases={0: 0},
        )(x)

    return pl.pallas_call(
        _identity_hbm_copy_kernel,
        out_shape=jax.ShapeDtypeStruct(x.shape, x.dtype),
        in_specs=[pl.BlockSpec(memory_space=pl.ANY)],
        out_specs=pl.BlockSpec(memory_space=pl.ANY),
        scratch_shapes=[pltpu.SemaphoreType.DMA(())],
    )(x)


if __name__ == "__main__":
    key = jax.random.PRNGKey(0)
    x = jax.random.normal(key, (2, 4, 16, 16), jnp.float32)

    # Default (aliased) path.
    out = identity(x)
    jax.block_until_ready(out)
    assert out.shape == x.shape and out.dtype == x.dtype
    assert jnp.array_equal(out, x), "identity (alias path) changed its input"

    # Explicit fresh-copy path: single HBM->HBM DMA.
    out_c = identity(x, copy=True)
    jax.block_until_ready(out_c)
    assert jnp.array_equal(out_c, x), "identity (DMA copy path) changed its input"

    # Ragged shape (last dim not a multiple of 128): both paths handle it with
    # no masked / lane-sparse stores, since neither goes through VMEM tiling.
    y = jax.random.normal(jax.random.PRNGKey(1), (8, 5, 3), jnp.float32)
    out_y = identity(y)
    out_yc = identity(y, copy=True)
    jax.block_until_ready((out_y, out_yc))
    assert jnp.array_equal(out_y, y), "identity (alias path, ragged) mismatch"
    assert jnp.array_equal(out_yc, y), "identity (DMA copy path, ragged) mismatch"

    print("KERNEL_OK")
</pallas_src>

<mosaic_0001>
module attributes {stable_mosaic.version = 11 : i64} {
  func.func @_identity_alias_kernel(%arg0: memref<2x4x16x16xf32, #tpu.memory_space<any>>, %arg1: memref<2x4x16x16xf32, #tpu.memory_space<any>>, %arg2: memref<1xi32, #tpu.memory_space<smem>>) attributes {dimension_semantics = [], scalar_prefetch = 0 : i64, scratch_operands = 1 : i64, tpu.core_type = #tpu.core_type<tc>} {
    %c0_i32 = arith.constant 0 : i32
    %c0 = arith.constant 0 : index
    %0 = memref.load %arg2[%c0] : memref<1xi32, #tpu.memory_space<smem>>
    memref.store %c0_i32, %arg2[%c0] : memref<1xi32, #tpu.memory_space<smem>>
    return
  }
}

</mosaic_0001>

<bundles_post_ra>
// kernel: tpu_custom_call.1
= control target key start
LH: loop header
LB: loop body
LE: loop exit
PB: predicated region body
PF: predicated region fallthrough
CT: control target
= control target key end

     0   :  { %s18_s0 = inlined_call_operand.hbm [shape: f32[2,4,16,16], index: 0, kind: input, shape index: {}, may-alias: {0,1}]   ;;  %s19_s1 = inlined_call_operand.hbm [shape: f32[2,4,16,16], index: 1, kind: output, shape index: {}, may-alias: {0,1}]  }

</bundles_post_ra>
